<compile_context>
chip_gen: v7x
topology: tpu7x:2x2x1
jax: 0.10.0
libtpu: 0.0.40
codegen_flags: <defaults>
</compile_context>

<pallas_src>
import jax
import jax.numpy as jnp
from jax.experimental import pallas as pl
from jax.experimental.pallas import tpu as pltpu

DIM_IN = 3
HIDDEN = 50
DIM_OUT = 1


def odefunc_kernel(y_ref, yo_ref, wa_ref, wb_ref, b1_ref, w2_ref, b2_ref, o_ref):
    # Feature-major: y_ref/yo_ref are [1, BN]; params are [HIDDEN, 1] / [1, 1].
    sy = jnp.sin(y_ref[...])          # [1, BN]
    so = jnp.sin(yo_ref[...])         # [1, BN]

    # Layer 1 as VPU broadcast-FMA (a K=3 contraction does not deserve the MXU).
    # [HIDDEN,1] * [1,BN] broadcasts to [HIDDEN, BN]; t-column already folded
    # into b1_ref by the wrapper.
    h = jnp.tanh(wa_ref[...] * sy + wb_ref[...] * so + b1_ref[...])   # [HIDDEN, BN]

    # Layer 2 as weighted sublane reduction (avoids a 1-column MXU result).
    out = jnp.sum(h * w2_ref[...], axis=0, keepdims=True) + b2_ref[...]  # [1, BN]
    o_ref[...] = out.astype(o_ref.dtype)


def odefunc_fast(t, y, y_other_dim, w1, b1, w2, b2, *, block_n=512):
    """Matches ODEFunc_fast.forward(t, y, y_other_dim); returns [N, 1]."""
    # ---- wrapper glue (cheap, scalar/feature-sized) ----
    y = jnp.atleast_1d(jnp.asarray(y, dtype=jnp.float32)).reshape(-1)
    n = y.shape[0]
    y_other = jnp.asarray(y_other_dim, dtype=jnp.float32).reshape(-1)
    y_other = jnp.broadcast_to(y_other, (n,))     # tolerate scalar y_other_dim
    t = jnp.asarray(t, dtype=jnp.float32)

    # Feature-major parameter prep (50 scalars each); fold t into the bias.
    wa = w1[0, :].reshape(HIDDEN, 1)                                    # [50, 1]
    wb = w1[1, :].reshape(HIDDEN, 1)                                    # [50, 1]
    b1e = (b1.reshape(-1) + jnp.sin(t) * w1[2, :]).reshape(HIDDEN, 1)   # [50, 1]
    w2c = w2.reshape(HIDDEN, 1)                                         # [50, 1]
    b2s = b2.reshape(1, 1)                                              # [1, 1]

    # Pad N up to a multiple of the lane-dense block size.
    n_pad = ((n + block_n - 1) // block_n) * block_n
    pad = n_pad - n
    y_row = jnp.pad(y, (0, pad)).reshape(1, n_pad)
    yo_row = jnp.pad(y_other, (0, pad)).reshape(1, n_pad)

    grid = (n_pad // block_n,)
    param_spec = pl.BlockSpec((HIDDEN, 1), lambda i: (0, 0))

    out = pl.pallas_call(
        odefunc_kernel,
        out_shape=jax.ShapeDtypeStruct((1, n_pad), jnp.float32),
        grid=grid,
        in_specs=[
            pl.BlockSpec((1, block_n), lambda i: (0, i)),   # y      [1, BN]
            pl.BlockSpec((1, block_n), lambda i: (0, i)),   # y_other[1, BN]
            param_spec,                                     # w1 row 0
            param_spec,                                     # w1 row 1
            param_spec,                                     # b1 + sin(t)*w1 row 2
            param_spec,                                     # w2 column
            pl.BlockSpec((1, 1), lambda i: (0, 0)),         # b2
        ],
        out_specs=pl.BlockSpec((1, block_n), lambda i: (0, i)),
        compiler_params=pltpu.CompilerParams(
            dimension_semantics=("parallel",)),
    )(y_row, yo_row, wa, wb, b1e, w2c, b2s)

    return out[0, :n].reshape(n, 1)


def init_params(key):
    # Deterministic init mirroring nn.init.normal_(std=0.1) / bias = 0.
    # Weights stored as [in_features, out_features] (x @ W + b orientation).
    k1, k2 = jax.random.split(key)
    w1 = 0.1 * jax.random.normal(k1, (DIM_IN, HIDDEN), dtype=jnp.float32)
    b1 = jnp.zeros((1, HIDDEN), dtype=jnp.float32)
    w2 = 0.1 * jax.random.normal(k2, (HIDDEN, DIM_OUT), dtype=jnp.float32)
    b2 = jnp.zeros((1, DIM_OUT), dtype=jnp.float32)
    return w1, b1, w2, b2


def _reference(t, y, y_other, w1, b1, w2, b2):
    n = y.shape[0]
    inp = jnp.concatenate(
        [y.reshape(n, 1), y_other.reshape(n, 1),
         jnp.full((n, 1), t, dtype=jnp.float32)], axis=1)
    return jnp.tanh(jnp.sin(inp) @ w1 + b1) @ w2 + b2


if __name__ == "__main__":
    key = jax.random.PRNGKey(0)
    kp, ky, ko, ky2, ko2 = jax.random.split(key, 5)

    w1, b1, w2, b2 = init_params(kp)

    # Small case (matches the solver-style call with a handful of states).
    N = 8
    t = 0.5
    y = jax.random.normal(ky, (N,), dtype=jnp.float32)
    y_other = jax.random.normal(ko, (N,), dtype=jnp.float32)

    out = odefunc_fast(t, y, y_other, w1, b1, w2, b2)
    jax.block_until_ready(out)
    ref = _reference(t, y, y_other, w1, b1, w2, b2)
    assert out.shape == (N, 1)
    assert jnp.allclose(out, ref, atol=1e-5, rtol=1e-5), "mismatch vs reference (N=8)"

    # Larger, non-multiple N exercising the multi-step lane-dense grid.
    N2 = 300
    y2 = jax.random.normal(ky2, (N2,), dtype=jnp.float32)
    y2_other = jax.random.normal(ko2, (N2,), dtype=jnp.float32)
    out2 = odefunc_fast(0.25, y2, y2_other, w1, b1, w2, b2, block_n=128)
    jax.block_until_ready(out2)
    ref2 = _reference(0.25, y2, y2_other, w1, b1, w2, b2)
    assert out2.shape == (N2, 1)
    assert jnp.allclose(out2, ref2, atol=1e-5, rtol=1e-5), "mismatch vs reference (N=300)"

    print("KERNEL_OK")
</pallas_src>

<mosaic_0001>
module attributes {stable_mosaic.version = 11 : i64} {
  func.func @odefunc_kernel(%arg0: i32, %arg1: memref<1x512xf32, #tpu.memory_space<vmem>>, %arg2: memref<1x512xf32, #tpu.memory_space<vmem>>, %arg3: memref<50x1xf32, #tpu.memory_space<vmem>>, %arg4: memref<50x1xf32, #tpu.memory_space<vmem>>, %arg5: memref<50x1xf32, #tpu.memory_space<vmem>>, %arg6: memref<50x1xf32, #tpu.memory_space<vmem>>, %arg7: memref<1x1xf32, #tpu.memory_space<vmem>>, %arg8: memref<1x512xf32, #tpu.memory_space<vmem>>) attributes {dimension_semantics = [#tpu.dimension_semantics<parallel>], iteration_bounds = array<i64: 1>, scalar_prefetch = 0 : i64, scratch_operands = 0 : i64, tpu.core_type = #tpu.core_type<tc>, window_params = [{transform_indices = @transform_0, window_bounds = array<i64: 1, 512>}, {transform_indices = @transform_1, window_bounds = array<i64: 1, 512>}, {pipeline_mode = #tpu.pipeline_mode<synchronous>, transform_indices = @transform_2, window_bounds = array<i64: 50, 1>}, {pipeline_mode = #tpu.pipeline_mode<synchronous>, transform_indices = @transform_3, window_bounds = array<i64: 50, 1>}, {pipeline_mode = #tpu.pipeline_mode<synchronous>, transform_indices = @transform_4, window_bounds = array<i64: 50, 1>}, {pipeline_mode = #tpu.pipeline_mode<synchronous>, transform_indices = @transform_5, window_bounds = array<i64: 50, 1>}, {pipeline_mode = #tpu.pipeline_mode<synchronous>, transform_indices = @transform_6, window_bounds = array<i64: 1, 1>}, {transform_indices = @transform_7, window_bounds = array<i64: 1, 512>}]} {
    %c0 = arith.constant 0 : index
    %c0_0 = arith.constant 0 : index
    %0 = vector.load %arg1[%c0, %c0_0] : memref<1x512xf32, #tpu.memory_space<vmem>>, vector<1x512xf32>
    %1 = math.sin %0 : vector<1x512xf32>
    %c0_1 = arith.constant 0 : index
    %c0_2 = arith.constant 0 : index
    %2 = vector.load %arg2[%c0_1, %c0_2] : memref<1x512xf32, #tpu.memory_space<vmem>>, vector<1x512xf32>
    %3 = math.sin %2 : vector<1x512xf32>
    %c0_3 = arith.constant 0 : index
    %c0_4 = arith.constant 0 : index
    %4 = vector.load %arg3[%c0_3, %c0_4] : memref<50x1xf32, #tpu.memory_space<vmem>>, vector<50x1xf32>
    %5 = vector.broadcast %4 : vector<50x1xf32> to vector<50x512xf32>
    %6 = vector.broadcast %1 : vector<1x512xf32> to vector<50x512xf32>
    %7 = arith.mulf %5, %6 : vector<50x512xf32>
    %c0_5 = arith.constant 0 : index
    %c0_6 = arith.constant 0 : index
    %8 = vector.load %arg4[%c0_5, %c0_6] : memref<50x1xf32, #tpu.memory_space<vmem>>, vector<50x1xf32>
    %9 = vector.broadcast %8 : vector<50x1xf32> to vector<50x512xf32>
    %10 = vector.broadcast %3 : vector<1x512xf32> to vector<50x512xf32>
    %11 = arith.mulf %9, %10 : vector<50x512xf32>
    %12 = arith.addf %7, %11 : vector<50x512xf32>
    %c0_7 = arith.constant 0 : index
    %c0_8 = arith.constant 0 : index
    %13 = vector.load %arg5[%c0_7, %c0_8] : memref<50x1xf32, #tpu.memory_space<vmem>>, vector<50x1xf32>
    %14 = vector.broadcast %13 : vector<50x1xf32> to vector<50x512xf32>
    %15 = arith.addf %12, %14 : vector<50x512xf32>
    %16 = math.tanh %15 : vector<50x512xf32>
    %c0_9 = arith.constant 0 : index
    %c0_10 = arith.constant 0 : index
    %17 = vector.load %arg6[%c0_9, %c0_10] : memref<50x1xf32, #tpu.memory_space<vmem>>, vector<50x1xf32>
    %18 = vector.broadcast %17 : vector<50x1xf32> to vector<50x512xf32>
    %19 = arith.mulf %16, %18 : vector<50x512xf32>
    %cst = arith.constant dense<0.000000e+00> : vector<512xf32>
    %20 = vector.multi_reduction <add>, %19, %cst [0] : vector<50x512xf32> to vector<512xf32>
    %21 = vector.shape_cast %20 : vector<512xf32> to vector<1x512xf32>
    %c0_11 = arith.constant 0 : index
    %c0_12 = arith.constant 0 : index
    %22 = vector.load %arg7[%c0_11, %c0_12] : memref<1x1xf32, #tpu.memory_space<vmem>>, vector<1x1xf32>
    %23 = vector.broadcast %22 : vector<1x1xf32> to vector<1x512xf32>
    %24 = arith.addf %21, %23 : vector<1x512xf32>
    %c0_13 = arith.constant 0 : index
    %c0_14 = arith.constant 0 : index
    %25 = vector.load %arg8[%c0_13, %c0_14] : memref<1x512xf32, #tpu.memory_space<vmem>>, vector<1x512xf32>
    tpu.vector_store %arg8[%c0_13, %c0_14], %24 {strides = array<i32>} : memref<1x512xf32, #tpu.memory_space<vmem>>, vector<1x512xf32>,
    return
  }
  func.func @transform_0(%arg0: i32) -> (i32, i32) {
    %c0_i32 = arith.constant 0 : i32
    %c0_i32_0 = arith.constant 0 : i32
    return %c0_i32, %arg0 : i32, i32
  }
  func.func @transform_1(%arg0: i32) -> (i32, i32) {
    %c0_i32 = arith.constant 0 : i32
    %c0_i32_0 = arith.constant 0 : i32
    return %c0_i32, %arg0 : i32, i32
  }
  func.func @transform_2(%arg0: i32) -> (i32, i32) {
    %c0_i32 = arith.constant 0 : i32
    %c0_i32_0 = arith.constant 0 : i32
    %c0_i32_1 = arith.constant 0 : i32
    return %c0_i32, %c0_i32_0 : i32, i32
  }
  func.func @transform_3(%arg0: i32) -> (i32, i32) {
    %c0_i32 = arith.constant 0 : i32
    %c0_i32_0 = arith.constant 0 : i32
    %c0_i32_1 = arith.constant 0 : i32
    return %c0_i32, %c0_i32_0 : i32, i32
  }
  func.func @transform_4(%arg0: i32) -> (i32, i32) {
    %c0_i32 = arith.constant 0 : i32
    %c0_i32_0 = arith.constant 0 : i32
    %c0_i32_1 = arith.constant 0 : i32
    return %c0_i32, %c0_i32_0 : i32, i32
  }
  func.func @transform_5(%arg0: i32) -> (i32, i32) {
    %c0_i32 = arith.constant 0 : i32
    %c0_i32_0 = arith.constant 0 : i32
    %c0_i32_1 = arith.constant 0 : i32
    return %c0_i32, %c0_i32_0 : i32, i32
  }
  func.func @transform_6(%arg0: i32) -> (i32, i32) {
    %c0_i32 = arith.constant 0 : i32
    %c0_i32_0 = arith.constant 0 : i32
    %c0_i32_1 = arith.constant 0 : i32
    return %c0_i32, %c0_i32_0 : i32, i32
  }
  func.func @transform_7(%arg0: i32) -> (i32, i32) {
    %c0_i32 = arith.constant 0 : i32
    %c0_i32_0 = arith.constant 0 : i32
    return %c0_i32, %arg0 : i32, i32
  }
}

</mosaic_0001>

<bundles_post_ra>
// kernel: tpu_custom_call.1
= control target key start
LH: loop header
LB: loop body
LE: loop exit
PB: predicated region body
PF: predicated region fallthrough
CT: control target
= control target key end

     0   :  { %s1323_s0 = inlined_call_operand.vmem [shape: f32[1,512], index: 0, kind: input, shape index: {}]   ;;  %s1324_s1 = inlined_call_operand.vmem [shape: f32[1,512], index: 1, kind: input, shape index: {}]   ;;  %s1325_s2 = inlined_call_operand.vmem [shape: f32[50,1], index: 2, kind: input, shape index: {}]   ;;  %s1326_s3 = inlined_call_operand.vmem [shape: f32[50,1], index: 3, kind: input, shape index: {}]   ;;  %s1327_s4 = inlined_call_operand.vmem [shape: f32[50,1], index: 4, kind: input, shape index: {}]   ;;  %s1328_s5 = inlined_call_operand.vmem [shape: f32[50,1], index: 5, kind: input, shape index: {}]   ;;  %s1329_s6 = inlined_call_operand.<no memory space> [shape: f32[1,1], index: 6, kind: input, shape index: {}]   ;;  %s1330_s7 = inlined_call_operand.hbm [shape: f32[1,512], index: 7, kind: output, shape index: {}]  }
   0x1   :  { %v12_v0 = vstv %s1329_s6 }
   0x2   :  { %13 = vst [vmem:[#allocation2] sm:$0x1] %v12_v0 }
   0x3   :  { %v330_v1 = vld [vmem:[%s1326_s3] sm:$0xff]  ;;  %v847_v3 = vmov 0   ;;  %v331_v4 = vld [vmem:[%s1326_s3 + $0x8] sm:$0xff]  ;;  %v332_v6 = vld [vmem:[%s1326_s3 + $0x10] sm:$0xff] }
   0x4   :  { %v239_v2 = vld [vmem:[%s1325_s2] sm:$0xff]  ;;  %758 = vset.pattern.permute.xlu1 %v847_v3  ;;  %757 = vset.pattern.permute.xlu0 %v847_v3  ;;  %v240_v5 = vld [vmem:[%s1325_s2 + $0x8] sm:$0xff]  ;;  %v241_v7 = vld [vmem:[%s1325_s2 + $0x10] sm:$0xff] }
   0x5   :  { %339 = vperm.xlu1 %758, %v330_v1   ;;  %248 = vperm.xlu0 %757, %v239_v2   ;;  %v920_v8 = vld [vmem:[%s1323_s0] sm:$0xf]  ;;  %v333_v9 = vld [vmem:[%s1326_s3 + $0x18] sm:$0xff] }
   0x6   :  { %v30_v10 = vand.u32 2147483647, %v920_v8  ;;  %v33_v11 = vand.u32 2139095040, %v920_v8  ;;  %v930_v12 = vld [vmem:[%s1324_s1] sm:$0xf]  ;;  %v242_v13 = vld [vmem:[%s1325_s2 + $0x18] sm:$0xff] }
   0x7   :  { %v135_v14 = vand.u32 2147483647, %v930_v12  ;;  %v138_v15 = vand.u32 2139095040, %v930_v12 }
   0x9   :  { %344 = vperm.xlu1 %758, %v331_v4   ;;  %253 = vperm.xlu0 %757, %v240_v5  }
   0xd   :  { %349 = vperm.xlu1 %758, %v332_v6   ;;  %258 = vperm.xlu0 %757, %v241_v7  }
   0xe   :  { %14 = vsyncpa [#allocation4], 0  ;;  %v34_v16 = vshrl.u32 %v33_v11, 23  ;;  %v37_v17 = vand.u32 8388607, %v30_v10  ;;  %v139_v18 = vshrl.u32 %v138_v15, 23 }
   0xf   :  { %v142_v19 = vand.u32 8388607, %v135_v14  ;;  %v450_v21 = vld [vmem:[%s1327_s4 + $0x8] sm:$0xff]  ;;  %v449_v22 = vld [vmem:[%s1327_s4] sm:$0xff]  ;;  %v848_v38 = vmov 683565275  }
  0x10   :  { %v732_v20 = vadd.s32 4294967169, %v34_v16  ;;  %v736_v23 = vadd.s32 4294967169, %v139_v18  ;;  %v38_v25 = vor.u32 8388608, %v37_v17  ;;  %v334_v28 = vld [vmem:[%s1326_s3 + $0x20] sm:$0xff]  ;;  %v849_v40 = vmov 2475754826  }
  0x11   :  { %354 = vperm.xlu1 %758, %v333_v9   ;;  %263 = vperm.xlu0 %757, %v242_v13   ;;  %v143_v26 = vor.u32 8388608, %v142_v19  ;;  %v243_v29 = vld [vmem:[%s1325_s2 + $0x20] sm:$0xff]  ;;  %v850_v42 = vmov 2131351028   ;;  %v244_v44 = vld [vmem:[%s1325_s2 + $0x28] sm:$0xff]  ;;  %v451_v45 = vld [vmem:[%s1327_s4 + $0x10] sm:$0xff] }
  0x12   :  { %v40_v24 = vadd.s32 1, %v732_v20  ;;  %v145_v27 = vadd.s32 1, %v736_v23  ;;  %v955_v34 = vshll.u32 %v38_v25, 8  ;;  %v851_v46 = vmov 2102212464   ;;  %v452_v61 = vld [vmem:[%s1327_s4 + $0x18] sm:$0xff] }
  0x13   :  { %v959_v36 = vshll.u32 %v143_v26, 8  ;;  %v852_v48 = vmov 920167782   ;;  %v853_v55 = vmov 1326507024   ;;  %v335_v62 = vld [vmem:[%s1326_s3 + $0x28] sm:$0xff] }
  0x14   :  { %vm41_vm0 = vcmp.gt.s32.totalorder %v40_v24, 0  ;;  %vm146_vm1 = vcmp.gt.s32.totalorder %v145_v27, 0  ;;  %v336_v19 = vld [vmem:[%s1326_s3 + $0x30] sm:$0x3]  ;;  %vm32_vm14 = vcmp.lt.s32.totalorder %v920_v8, 0  ;;  %vm137_vm15 = vcmp.lt.s32.totalorder %v930_v12, 0 }
  0x15   :  { %463 = vperm.xlu1 %758, %v450_v21   ;;  %458 = vperm.xlu0 %757, %v449_v22   ;;  %v42_v30 = vsel %vm41_vm0, %v40_v24, 0  ;;  %v147_v33 = vsel %vm146_vm1, %v145_v27, 0  ;;  %v245_v20 = vld [vmem:[%s1325_s2 + $0x30] sm:$0x3]  ;;  %vm1088_vm0 = vcmp.le.f32.partialorder %v30_v10, 0.7853982 }
  0x16   :  { %v953_v31 = vshrl.u32 %v42_v30, 5  ;;  %v44_v32 = vand.u32 31, %v42_v30  ;;  %v957_v35 = vand.u32 31, %v147_v33  ;;  %v148_v18 = vshrl.u32 %v147_v33, 5 }
  0x17   :  { %vm136_vm1 = vcmp.le.f32.partialorder %v135_v14, 0.7853982 }
  0x18   :  { %v45_v37 = vsub.s32 32, %v44_v32  ;;  %v47_v39 = vshll.u32 %v848_v38, %v44_v32  ;;  %v50_v41 = vshll.u32 %v849_v40, %v44_v32  ;;  %v53_v43 = vshll.u32 %v850_v42, %v44_v32 }
  0x19   :  { %359 = vperm.xlu1 %758, %v334_v28   ;;  %268 = vperm.xlu0 %757, %v243_v29   ;;  %v56_v47 = vshll.u32 %v851_v46, %v44_v32  ;;  %v59_v49 = vshll.u32 %v852_v48, %v44_v32  ;;  %vm62_vm2 = vcmp.lt.s32.totalorder %v953_v31, 1  ;;  %vm63_vm3 = vcmp.lt.s32.totalorder %v953_v31, 2 }
  0x1a   :  { %v46_v50 = vshrl.u32 %v848_v38, %v45_v37  ;;  %v48_v51 = vshrl.u32 %v849_v40, %v45_v37  ;;  %v51_v52 = vshrl.u32 %v850_v42, %v45_v37  ;;  %v54_v53 = vshrl.u32 %v851_v46, %v45_v37 }
  0x1b   :  { %v57_v54 = vshrl.u32 %v852_v48, %v45_v37  ;;  %v60_v56 = vshrl.u32 %v853_v55, %v45_v37  ;;  %vm64_vm4 = vcmp.lt.s32.totalorder %v953_v31, 3  ;;  %vm65_vm5 = vcmp.lt.s32.totalorder %v953_v31, 4 }
  0x1c   :  { %v49_v57 = vor.u32 %v48_v51, %v47_v39  ;;  %v52_v58 = vor.u32 %v51_v52, %v50_v41  ;;  %v55_v59 = vor.u32 %v54_v53, %v53_v43  ;;  %v150_v60 = vsub.s32 32, %v957_v35  ;;  %v454_v39 = vld [vmem:[%s1327_s4 + $0x28] sm:$0xff]  ;;  %v547_v51 = vld [vmem:[%s1328_s5] sm:$0xff]  ;;  %v455_v52 = vld [vmem:[%s1327_s4 + $0x30] sm:$0x3] }
  0x1d   :  { %273 = vperm.xlu1 %758, %v244_v44   ;;  %468 = vperm.xlu0 %757, %v451_v45   ;;  %v58_v63 = vor.u32 %v57_v54, %v56_v47  ;;  %v61_v0 = vor.u32 %v60_v56, %v59_v49  ;;  %v152_v1 = vshll.u32 %v848_v38, %v957_v35  ;;  %vm167_vm6 = vcmp.lt.s32.totalorder %v148_v18, 1 }
  0x1e   :  { %v155_v2 = vshll.u32 %v849_v40, %v957_v35  ;;  %v66_v3 = vsel %vm62_vm2, %v46_v50, %v49_v57  ;;  %v67_v4 = vsel %vm65_vm5, %v55_v59, 2102212464  ;;  %v70_v5 = vsel %vm62_vm2, %v49_v57, %v52_v58 }
  0x1f   :  { %v74_v6 = vsel %vm62_vm2, %v52_v58, %v55_v59  ;;  %v68_v7 = vsel %vm64_vm4, %v52_v58, %v67_v4  ;;  %v71_v9 = vsel %vm65_vm5, %v58_v63, 920167782  ;;  %v75_v11 = vsel %vm65_vm5, %v61_v0, 1326507024 }
  0x20   :  { %v151_v13 = vshrl.u32 %v848_v38, %v150_v60  ;;  %v69_v15 = vsel %vm63_vm3, %v66_v3, %v68_v7  ;;  %v72_v16 = vsel %vm64_vm4, %v55_v59, %v71_v9  ;;  %v76_v17 = vsel %vm64_vm4, %v58_v63, %v75_v11  ;;  %v550_v7 = vld [vmem:[%s1328_s5 + $0x18] sm:$0xff] }
  0x21   :  { %473 = vperm.xlu1 %758, %v452_v61   ;;  %364 = vperm.xlu0 %757, %v335_v62   ;;  %v73_v21 = vsel %vm63_vm3, %v70_v5, %v72_v16  ;;  %v77_v22 = vsel %vm63_vm3, %v74_v6, %v76_v17  ;;  %v85_v23 = vmul.u32 %v955_v34, %v69_v15  ;;  %vm168_vm7 = vcmp.lt.s32.totalorder %v148_v18, 2  ;;  %v551_v6 = vld [vmem:[%s1328_s5 + $0x20] sm:$0xff]  ;;  %v553_v15 = vld [vmem:[%s1328_s5 + $0x30] sm:$0x3]  ;;  %v552_v16 = vld [vmem:[%s1328_s5 + $0x28] sm:$0xff] }
  0x22   :  { %v153_v24 = vshrl.u32 %v849_v40, %v150_v60  ;;  %v1012_v25 = vmul.u32.u64.low %v955_v34, %v77_v22  ;;  %v1013_v26 = vmul.u32.u64.high %v955_v34, %v77_v22, %v1012_v25  ;;  %v156_v30 = vshrl.u32 %v850_v42, %v150_v60 }
  0x23   :  { %v1016_v27 = vmul.u32.u64.low %v955_v34, %v73_v21  ;;  %v1017_v28 = vmul.u32.u64.high %v955_v34, %v73_v21, %v1016_v27  ;;  %v158_v32 = vshll.u32 %v850_v42, %v957_v35  ;;  %v159_v33 = vshrl.u32 %v851_v46, %v150_v60  ;;  %v453_v34 = vld [vmem:[%s1327_s4 + $0x20] sm:$0xff] }
  0x24   :  { %v154_v29 = vor.u32 %v153_v24, %v152_v1  ;;  %v161_v31 = vshll.u32 %v851_v46, %v957_v35  ;;  %v162_v37 = vshrl.u32 %v852_v48, %v150_v60  ;;  %v164_v38 = vshll.u32 %v852_v48, %v957_v35  ;;  %v549_v1 = vld [vmem:[%s1328_s5 + $0x10] sm:$0xff] }
  0x25   :  { %369 = vperm.xlu1 %758, %v336_v19   ;;  %278 = vperm.xlu0 %757, %v245_v20   ;;  %v157_v40 = vor.u32 %v156_v30, %v155_v2  ;;  %v160_v41 = vor.u32 %v159_v33, %v158_v32  ;;  %v165_v42 = vshrl.u32 %v853_v55, %v150_v60  ;;  %v88_v43 = vadd.s32 1, %v1017_v28  ;;  %v548_v2 = vld [vmem:[%s1328_s5 + $0x8] sm:$0xff]  ;;  %v670_v20 = vld [vmem:[#allocation2] sm:$0x1]  ;;  %s855_s5 = smov [#allocation3]  }
  0x26   :  { %vm87_vm8 = vc.u32 %v1013_v26, %v1016_v27  ;;  %v163_v44 = vor.u32 %v162_v37, %v161_v31  ;;  %vm169_vm9 = vcmp.lt.s32.totalorder %v148_v18, 3  ;;  %vm170_vm10 = vcmp.lt.s32.totalorder %v148_v18, 4  ;;  %s724_s8 = sshll.u32 %s855_s5, 4  ;;  %s725_s8 = int_to_ptr.vmem [resolvable:$true] %s724_s8 }
  0x27   :  { %v166_v35 = vor.u32 %v165_v42, %v164_v38  ;;  %v171_v45 = vsel %vm167_vm6, %v151_v13, %v154_v29  ;;  %v175_v46 = vsel %vm167_vm6, %v154_v29, %v157_v40  ;;  %v89_v47 = vsel %vm87_vm8, %v88_v43, %v1017_v28  ;;  %s823_s9 = scalar_lea.vmem %s725_s8, 64  ;;  %p828_p1 = scmp.lt.s32.totalorder %s725_s8, %s725_s8 }
  0x28   :  { %v172_v48 = vsel %vm170_vm10, %v160_v41, 2102212464  ;;  %v176_v49 = vsel %vm170_vm10, %v163_v44, 920167782  ;;  %v179_v50 = vsel %vm167_vm6, %v157_v40, %v160_v41  ;;  %v90_v56 = vadd.s32 %v89_v47, %v85_v23  ;;  %p824_p0 = scmp.ne.s32.totalorder %s725_s8, %s823_s9  ;;  %p829_p2 = scmp.lt.s32.totalorder %s823_s9, %s823_s9 }
  0x29   :  { %483 = vperm.xlu1 %758, %v454_v39   ;;  %478 = vperm.xlu0 %757, %v453_v34   ;;  %v173_v53 = vsel %vm169_vm9, %v157_v40, %v172_v48  ;;  %v177_v54 = vsel %vm169_vm9, %v160_v41, %v176_v49  ;;  %v180_v55 = vsel %vm170_vm10, %v166_v35, 1326507024  ;;  %v86_v34 = vadd.s32 %v1016_v27, %v1013_v26 }
  0x2a   :  { %v178_v57 = vsel %vm168_vm7, %v175_v46, %v177_v54  ;;  %v181_v58 = vsel %vm169_vm9, %v163_v44, %v180_v55  ;;  %v174_v59 = vsel %vm168_vm7, %v171_v45, %v173_v53  ;;  %v91_v3 = vadd.s32 536870912, %v90_v56  ;;  %p830_p3 = por %p829_p2, %p828_p1 }
  0x2b   :  { %v182_v60 = vsel %vm168_vm7, %v179_v50, %v181_v58  ;;  %v1049_v61 = vmul.u32.u64.low %v959_v36, %v178_v57  ;;  %v1050_v62 = vmul.u32.u64.high %v959_v36, %v178_v57, %v1049_v61  ;;  %v190_v4 = vmul.u32 %v959_v36, %v174_v59 }
  0x2c   :  { %v1053_v63 = vmul.u32.u64.low %v959_v36, %v182_v60  ;;  %v1054_v0 = vmul.u32.u64.high %v959_v36, %v182_v60, %v1053_v63  ;;  %v1072_v11 = vshrl.u32 %v91_v3, 30  ;;  %vm122_vm8 = vweird.f32 %v920_v8  ;;  %p831_p4 = pnand %p830_p3, %p824_p0 }
  0x2d   :  { %556 = vperm.xlu1 %758, %v547_v51   ;;  %488 = vperm.xlu0 %757, %v455_v52   ;;  %v193_v5 = vadd.s32 1, %v1050_v62  ;;  %vm227_vm9 = vweird.f32 %v930_v12  ;;  %vm622_vm10 = vcmask 1041408  }
  0x2e   :  { %vm192_vm11 = vc.u32 %v1054_v0, %v1049_v61  ;;  %v93_v17 = vshll.u32 %v1072_v11, 30  ;;  %v191_v42 = vadd.s32 %v1049_v61, %v1054_v0  ;;  %v116_v0 = vsub.s32 4, %v1072_v11 }
  0x2f   :  { %v194_v9 = vsel %vm192_vm11, %v193_v5, %v1050_v62 }
  0x30   :  { %v195_v13 = vadd.s32 %v194_v9, %v190_v4  ;;  %v94_v21 = vsub.s32 %v90_v56, %v93_v17  ;;  %v117_v10 = vsel %vm32_vm14, %v116_v0, %v1072_v11 }
  0x31   :  { %566 = vperm.xlu1 %758, %v549_v1   ;;  %561 = vperm.xlu0 %757, %v548_v2   ;;  %v119_v14 = vsel %vm1088_vm0, 0, %v117_v10 }
  0x32   :  { %v196_v36 = vadd.s32 536870912, %v195_v13  ;;  %v96_v23 = vsub.s32 0, %v94_v21  ;;  %v123_v5 = vadd.s32 3, %v119_v14 }
  0x34   :  { %v197_v18 = vshrl.u32 %v196_v36, 30  ;;  %v733_v25 = vmin.u32 %v96_v23, %v94_v21  ;;  %v124_v36 = vand.u32 3, %v123_v5 }
  0x35   :  { %576 = vperm.xlu1 %758, %v551_v6   ;;  %571 = vperm.xlu0 %757, %v550_v7  }
  0x36   :  { %v198_v19 = vshll.u32 %v197_v18, 30  ;;  %v98_v29 = vclz %v733_v25  ;;  %v221_v1 = vsub.s32 4, %v197_v18  ;;  %vm126_vm2 = vcmp.eq.s32.totalorder %v124_v36, 0 }
  0x37   :  { %vm129_vm3 = vcmp.eq.s32.totalorder %v124_v36, 2  ;;  %vm125_vm6 = vcmp.lt.s32.totalorder %v124_v36, 2 }
  0x38   :  { %v199_v22 = vsub.s32 %v195_v13, %v198_v19  ;;  %v734_v32 = vadd.s32 4294967294, %v98_v29  ;;  %v222_v3 = vsel %vm137_vm15, %v221_v1, %v197_v18 }
  0x39   :  { %586 = vperm.xlu1 %758, %v553_v15   ;;  %581 = vperm.xlu0 %757, %v552_v16   ;;  %v224_v4 = vsel %vm136_vm1, 0, %v222_v3 }
  0x3a   :  { %v201_v24 = vsub.s32 0, %v199_v22  ;;  %vm735_vm12 = vcmp.lt.s32.totalorder %v734_v32, 0  ;;  %v228_v6 = vadd.s32 3, %v224_v4 }
  0x3b   :  { %v101_v31 = vsel %vm735_vm12, 0, %v734_v32 }
  0x3c   :  { %v737_v28 = vmin.u32 %v201_v24, %v199_v22  ;;  %v106_v38 = vsub.s32 4294967266, %v101_v31  ;;  %v102_v40 = vsub.s32 32, %v101_v31  ;;  %v103_v35 = vshll.u32 %v94_v21, %v101_v31 }
  0x3d   :  { %673 = vperm.xlu0 %757, %v670_v20   ;;  %v229_v19 = vand.u32 3, %v228_v6  ;;  %v282_v20 = vlaneseq }
  0x3e   :  { %v203_v30 = vclz %v737_v28  ;;  %v107_v41 = vadd.s32 127, %v106_v38  ;;  %v104_v45 = vshrl.u32 %v86_v34, %v102_v40 }
  0x3f   :  { %vm231_vm4 = vcmp.eq.s32.totalorder %v229_v19, 0  ;;  %vm234_vm5 = vcmp.eq.s32.totalorder %v229_v19, 2  ;;  %v1103_v29 = vshrl.u32 %v282_v20, 7  ;;  %vm230_vm7 = vcmp.lt.s32.totalorder %v229_v19, 2 }
  0x40   :  { %v738_v33 = vadd.s32 4294967294, %v203_v30  ;;  %v108_v46 = vshll.u32 %v107_v41, 23  ;;  %v105_v50 = vor.u32 %v104_v45, %v103_v35  ;;  %vm715_vm11 = vcmp.lt.s32.totalorder %v282_v20, 512 }
  0x41   :  { %v288_v34 = vsub.s32 1, %v1103_v29 }
  0x42   :  { %vm739_vm13 = vcmp.lt.s32.totalorder %v738_v33, 0  ;;  %v109_v51 = vor.u32 4788187, %v108_v46  ;;  %v112_v55 = vcvt.s32.f32 %v105_v50 }
  0x43   :  { %v206_v37 = vsel %vm739_vm13, 0, %v738_v33 }
  0x44   :  { %v211_v39 = vsub.s32 4294967266, %v206_v37  ;;  %v207_v43 = vsub.s32 32, %v206_v37  ;;  %v208_v47 = vshll.u32 %v199_v22, %v206_v37  ;;  %v110_v54 = vand.u32 2147483647, %v109_v51 }
  0x46   :  { %v212_v44 = vadd.s32 127, %v211_v39  ;;  %v209_v48 = vshrl.u32 %v191_v42, %v207_v43  ;;  %v113_v27 = vmul.f32 %v112_v55, %v110_v54  ;;  %v1110_v39 = vsub.s32 0, %v1103_v29 }
  0x47   :  { %v292_v42 = vsub.s32 2, %v1103_v29  ;;  %v296_v43 = vsub.s32 3, %v1103_v29 }
  0x48   :  { %v213_v49 = vshll.u32 %v212_v44, 23  ;;  %v210_v52 = vor.u32 %v209_v48, %v208_v47  ;;  %v114_v58 = vxor.u32 2147483648, %v113_v27 }
  0x4a   :  { %v214_v53 = vor.u32 4788187, %v213_v49  ;;  %v217_v26 = vcvt.s32.f32 %v210_v52  ;;  %v115_v61 = vsel %vm32_vm14, %v114_v58, %v113_v27 }
  0x4b   :  { %v118_v63 = vsel %vm1088_vm0, %v920_v8, %v115_v61 }
  0x4c   :  { %v215_v56 = vand.u32 2147483647, %v214_v53  ;;  %759 = vcosq.f32 %v118_v63 }
  0x4d   :  { %761 = vsinq.f32 %v118_v63 }
  0x4e   :  { %v218_v57 = vmul.f32 %v217_v26, %v215_v56 }
  0x50   :  { %v219_v59 = vxor.u32 2147483648, %v218_v57 }
  0x52   :  { %v220_v62 = vsel %vm137_vm15, %v219_v59, %v218_v57 }
  0x53   :  { %v223_v2 = vsel %vm136_vm1, %v930_v12, %v220_v62 }
  0x54   :  { %763 = vcosq.f32 %v223_v2 }
  0x55   :  { %765 = vsinq.f32 %v223_v2 }
  0x56   :  { %v760_v7 = vpop.eup %759 }
  0x57   :  { %v762_v9 = vpop.eup %761  ;;  %v130_v11 = vxor.u32 2147483648, %v760_v7 }
  0x58   :  { %v127_v21 = vxor.u32 2147483648, %v762_v9 }
  0x59   :  { %v131_v28 = vsel %vm129_vm3, %v130_v11, %v762_v9 }
  0x5a   :  { %v128_v25 = vsel %vm126_vm2, %v760_v7, %v127_v21 }
  0x5b   :  { %v132_v37 = vsel %vm125_vm6, %v128_v25, %v131_v28 }
  0x5c   :  { %v133_v44 = vsel %vm122_vm8, nan, %v132_v37 }
  0x5d   :  { %v1120_v8 = vrot.slane %v133_v44, %v1110_v39  ;;  %v1122_v12 = vrot.slane %v133_v44, %v288_v34  ;;  %v1126_v47 = vrot.slane %v133_v44, %v292_v42  ;;  %v1128_v48 = vrot.slane %v133_v44, %v296_v43 }
  0x5e   :  { %v764_v13 = vpop.eup %763 }
  0x5f   :  { %v766_v15 = vpop.eup %765  ;;  %v235_v22 = vxor.u32 2147483648, %v764_v13 }
  0x60   :  { %v232_v18 = vxor.u32 2147483648, %v766_v15 }
  0x61   :  { %v236_v32 = vsel %vm234_vm5, %v235_v22, %v766_v15 }
  0x62   :  { %v233_v30 = vsel %vm231_vm4, %v764_v13, %v232_v18 }
  0x63   :  { %v237_v38 = vsel %vm230_vm7, %v233_v30, %v236_v32 }
  0x64   :  { %v238_v35 = vsel %vm227_vm9, nan, %v237_v38 }
  0x65   :  { %v1131_v49 = vrot.slane %v238_v35, %v1110_v39  ;;  %v1133_v50 = vrot.slane %v238_v35, %v288_v34  ;;  %v1135_v51 = vrot.slane %v238_v35, %v292_v42  ;;  %v1137_v52 = vrot.slane %v238_v35, %v296_v43 }
  0x84   :  { %v340_v16 = vpop.permute.xlu1 %339  ;;  %v249_v17 = vpop.permute.xlu0 %248 }
  0x85   :  { %v302_v53 = vmul.f32 %v1120_v8, %v249_v17  ;;  %v303_v54 = vmul.f32 %v1122_v12, %v249_v17  ;;  %v304_v26 = vmul.f32 %v1126_v47, %v249_v17  ;;  %v305_v27 = vmul.f32 %v1128_v48, %v249_v17 }
  0x86   :  { %v393_v57 = vmul.f32 %v1131_v49, %v340_v16  ;;  %v394_v58 = vmul.f32 %v1133_v50, %v340_v16  ;;  %v395_v61 = vmul.f32 %v1135_v51, %v340_v16  ;;  %v396_v62 = vmul.f32 %v1137_v52, %v340_v16 }
  0x88   :  { %v345_v23 = vpop.permute.xlu1 %344  ;;  %v254_v24 = vpop.permute.xlu0 %253  ;;  %v421_v5 = vadd.f32 %v393_v57, %v302_v53  ;;  %v422_v6 = vadd.f32 %v394_v58, %v303_v54  ;;  %v423_v7 = vadd.f32 %v395_v61, %v304_v26  ;;  %v424_v9 = vadd.f32 %v396_v62, %v305_v27 }
  0x89   :  { %v306_v59 = vmul.f32 %v1120_v8, %v254_v24  ;;  %v307_v60 = vmul.f32 %v1122_v12, %v254_v24  ;;  %v308_v63 = vmul.f32 %v1126_v47, %v254_v24  ;;  %v397_v0 = vmul.f32 %v1131_v49, %v345_v23 }
  0x8a   :  { %v398_v1 = vmul.f32 %v1133_v50, %v345_v23  ;;  %v399_v2 = vmul.f32 %v1135_v51, %v345_v23  ;;  %v309_v10 = vmul.f32 %v1128_v48, %v254_v24  ;;  %v400_v3 = vmul.f32 %v1137_v52, %v345_v23 }
  0x8b   :  { %v425_v13 = vadd.f32 %v397_v0, %v306_v59 }
  0x8c   :  { %v1105_v33 = vpop.permute.xlu1 %349  ;;  %v259_v31 = vpop.permute.xlu0 %258  ;;  %v426_v36 = vadd.f32 %v398_v1, %v307_v60  ;;  %v427_v15 = vadd.f32 %v399_v2, %v308_v63  ;;  %v1167_v21 = vadd.f32 %v400_v3, %v309_v10 }
  0x8d   :  { %v1162_v17 = vmul.f32 %v1120_v8, %v259_v31  ;;  %v1165_v19 = vmul.f32 %v1122_v12, %v259_v31  ;;  %v1172_v23 = vmul.f32 %v1126_v47, %v259_v31  ;;  %v1175_v24 = vmul.f32 %v1128_v48, %v259_v31 }
  0x8e   :  { %v1179_v25 = vmul.f32 %v1131_v49, %v1105_v33  ;;  %v1183_v30 = vmul.f32 %v1133_v50, %v1105_v33  ;;  %v1187_v32 = vmul.f32 %v1135_v51, %v1105_v33  ;;  %v1191_v37 = vmul.f32 %v1137_v52, %v1105_v33 }
  0x90   :  { %v1113_v40 = vpop.permute.xlu1 %354  ;;  %v1115_v41 = vpop.permute.xlu0 %263 }
  0x91   :  { %v1197_v42 = vmul.f32 %v1120_v8, %v1115_v41  ;;  %v1201_v43 = vmul.f32 %v1122_v12, %v1115_v41  ;;  %v1205_v44 = vmul.f32 %v1126_v47, %v1115_v41 }
  0x94   :  { %v1124_v45 = vpop.permute.xlu1 %463  ;;  %v459_v46 = vpop.permute.xlu0 %458 }
  0x95   :  { %v491_v16 = vadd.f32 %v459_v46, %v421_v5  ;;  %v492_v11 = vadd.f32 %v459_v46, %v422_v6  ;;  %v493_v28 = vadd.f32 %v459_v46, %v423_v7  ;;  %v494_v38 = vadd.f32 %v459_v46, %v424_v9 }
  0x96   :  { %v495_v33 = vadd.f32 %v1124_v45, %v425_v13  ;;  %v496_v57 = vadd.f32 %v1124_v45, %v426_v36  ;;  %v497_v58 = vadd.f32 %v1124_v45, %v427_v15  ;;  %v317_v15 = vmul.f32 %v1128_v48, %v1115_v41 }
  0x97   :  { %767 = vtanh.f32 %v491_v16  ;;  %v406_v41 = vmul.f32 %v1133_v50, %v1113_v40 }
  0x98   :  { %v1141_v55 = vpop.permute.xlu1 %359  ;;  %v1143_v56 = vpop.permute.xlu0 %268  ;;  %769 = vtanh.f32 %v492_v11 }
  0x99   :  { %771 = vtanh.f32 %v493_v28  ;;  %v405_v28 = vmul.f32 %v1131_v49, %v1113_v40 }
  0x9a   :  { %773 = vtanh.f32 %v494_v38 }
  0x9b   :  { %775 = vtanh.f32 %v495_v33 }
  0x9c   :  { %v274_v14 = vpop.permute.xlu1 %273  ;;  %v1159_v4 = vpop.permute.xlu0 %468  ;;  %777 = vtanh.f32 %v496_v57 }
  0x9d   :  { %v322_v53 = vmul.f32 %v1120_v8, %v274_v14  ;;  %v323_v54 = vmul.f32 %v1122_v12, %v274_v14  ;;  %v324_v27 = vmul.f32 %v1126_v47, %v274_v14  ;;  %v325_v16 = vmul.f32 %v1128_v48, %v274_v14 }
  0x9e   :  { %779 = vtanh.f32 %v497_v58  ;;  %v407_v58 = vmul.f32 %v1135_v51, %v1113_v40 }
  0xa0   :  { %v1169_v18 = vpop.permute.xlu1 %473  ;;  %v365_v22 = vpop.permute.xlu0 %364 }
  0xa1   :  { %v413_v31 = vmul.f32 %v1131_v49, %v365_v22  ;;  %v414_v34 = vmul.f32 %v1133_v50, %v365_v22  ;;  %v415_v26 = vmul.f32 %v1135_v51, %v365_v22  ;;  %v416_v7 = vmul.f32 %v1137_v52, %v365_v22 }
  0xa3   :  { %v441_v61 = vadd.f32 %v413_v31, %v322_v53  ;;  %v442_v62 = vadd.f32 %v414_v34, %v323_v54  ;;  %v443_v9 = vadd.f32 %v415_v26, %v324_v27  ;;  %v444_v53 = vadd.f32 %v416_v7, %v325_v16 }
  0xa4   :  { %v370_v35 = vpop.permute.xlu1 %369  ;;  %v279_v46 = vpop.permute.xlu0 %278 }
  0xa5   :  { %v326_v59 = vmul.f32 %v1120_v8, %v279_v46  ;;  %v327_v60 = vmul.f32 %v1122_v12, %v279_v46  ;;  %v328_v63 = vmul.f32 %v1126_v47, %v279_v46  ;;  %v417_v0 = vmul.f32 %v1131_v49, %v370_v35 }
  0xa6   :  { %v418_v1 = vmul.f32 %v1133_v50, %v370_v35  ;;  %v419_v2 = vmul.f32 %v1135_v51, %v370_v35  ;;  %v329_v5 = vmul.f32 %v1128_v48, %v279_v46  ;;  %v420_v6 = vmul.f32 %v1137_v52, %v370_v35  ;;  %v1230_v35 = vpop.eup %767 }
  0xa7   :  { %v445_v38 = vadd.f32 %v417_v0, %v326_v59  ;;  %v1234_v33 = vpop.eup %769  ;;  %v408_v59 = vmul.f32 %v1137_v52, %v1113_v40  ;;  %v431_v0 = vadd.f32 %v1187_v32, %v1172_v23  ;;  %v498_v40 = vadd.f32 %v1124_v45, %v1167_v21 }
  0xa8   :  { %v484_v10 = vpop.permute.xlu1 %483  ;;  %v1220_v3 = vpop.permute.xlu0 %478  ;;  %v446_v31 = vadd.f32 %v418_v1, %v327_v60  ;;  %v447_v34 = vadd.f32 %v419_v2, %v328_v63  ;;  %v448_v46 = vadd.f32 %v420_v6, %v329_v5  ;;  %v430_v63 = vadd.f32 %v1183_v30, %v1165_v19 }
  0xa9   :  { %v511_v13 = vadd.f32 %v484_v10, %v441_v61  ;;  %v512_v36 = vadd.f32 %v484_v10, %v442_v62  ;;  %v513_v11 = vadd.f32 %v484_v10, %v443_v9  ;;  %v1236_v27 = vpop.eup %771  ;;  %v514_v61 = vadd.f32 %v484_v10, %v444_v53 }
  0xaa   :  { %v1242_v60 = vpop.eup %773  ;;  %v429_v62 = vadd.f32 %v1179_v25, %v1162_v17  ;;  %v432_v1 = vadd.f32 %v1191_v37, %v1175_v24  ;;  %v433_v2 = vadd.f32 %v405_v28, %v1197_v42  ;;  %v434_v10 = vadd.f32 %v406_v41, %v1201_v43 }
  0xab   :  { %781 = vtanh.f32 %v511_v13  ;;  %v435_v19 = vadd.f32 %v407_v58, %v1205_v44  ;;  %v436_v30 = vadd.f32 %v408_v59, %v317_v15  ;;  %v500_v23 = vadd.f32 %v1159_v4, %v430_v63  ;;  %v776_v32 = vpop.eup %775 }
  0xac   :  { %v489_v22 = vpop.permute.xlu0 %488  ;;  %783 = vtanh.f32 %v512_v36  ;;  %v499_v17 = vadd.f32 %v1159_v4, %v429_v62  ;;  %v1257_v25 = vpop.permute.xlu1 %556  ;;  %v318_v45 = vmul.f32 %v1120_v8, %v1143_v56  ;;  %v409_v21 = vmul.f32 %v1131_v49, %v1141_v55 }
  0xad   :  { %v515_v14 = vadd.f32 %v489_v22, %v445_v38  ;;  %v516_v54 = vadd.f32 %v489_v22, %v446_v31  ;;  %v517_v26 = vadd.f32 %v489_v22, %v447_v34  ;;  %v518_v57 = vadd.f32 %v489_v22, %v448_v46  ;;  %v778_v37 = vpop.eup %777 }
  0xae   :  { %785 = vtanh.f32 %v513_v11  ;;  %v501_v24 = vadd.f32 %v1159_v4, %v431_v0  ;;  %v319_v42 = vmul.f32 %v1122_v12, %v1143_v56  ;;  %v410_v43 = vmul.f32 %v1133_v50, %v1141_v55  ;;  %v780_v5 = vpop.eup %779 }
  0xaf   :  { %787 = vtanh.f32 %v515_v14  ;;  %v502_v44 = vadd.f32 %v1159_v4, %v432_v1  ;;  %v320_v6 = vmul.f32 %v1126_v47, %v1143_v56  ;;  %v411_v8 = vmul.f32 %v1135_v51, %v1141_v55 }
  0xb0   :  { %789 = vtanh.f32 %v516_v54  ;;  %v503_v49 = vadd.f32 %v1169_v18, %v433_v2  ;;  %v321_v12 = vmul.f32 %v1128_v48, %v1143_v56  ;;  %v412_v50 = vmul.f32 %v1137_v52, %v1141_v55  ;;  %v562_v47 = vpop.permute.xlu0 %561  ;;  %v567_v15 = vpop.permute.xlu1 %566 }
  0xb1   :  { %791 = vtanh.f32 %v517_v26  ;;  %v504_v4 = vadd.f32 %v1169_v18, %v434_v10  ;;  %v437_v13 = vadd.f32 %v409_v21, %v318_v45  ;;  %v505_v51 = vadd.f32 %v1169_v18, %v435_v19 }
  0xb2   :  { %793 = vtanh.f32 %v518_v57  ;;  %v438_v16 = vadd.f32 %v410_v43, %v319_v42  ;;  %v506_v11 = vadd.f32 %v1169_v18, %v436_v30  ;;  %v439_v56 = vadd.f32 %v411_v8, %v320_v6 }
  0xb3   :  { %795 = vtanh.f32 %v514_v61  ;;  %v507_v52 = vadd.f32 %v1220_v3, %v437_v13  ;;  %v440_v28 = vadd.f32 %v412_v50, %v321_v12  ;;  %v593_v31 = vmul.f32 %v776_v32, %v562_v47 }
  0xb4   :  { %797 = vtanh.f32 %v498_v40  ;;  %v508_v38 = vadd.f32 %v1220_v3, %v438_v16  ;;  %v509_v22 = vadd.f32 %v1220_v3, %v439_v56  ;;  %v594_v46 = vmul.f32 %v778_v37, %v562_v47  ;;  %v577_v58 = vpop.permute.xlu1 %576  ;;  %v572_v63 = vpop.permute.xlu0 %571 }
  0xb5   :  { %799 = vtanh.f32 %v499_v17  ;;  %v1276_v7 = vpop.eup %781  ;;  %v510_v18 = vadd.f32 %v1220_v3, %v440_v28  ;;  %v589_v41 = vmul.f32 %v1230_v35, %v1257_v25  ;;  %v595_v14 = vmul.f32 %v780_v5, %v562_v47 }
  0xb6   :  { %801 = vtanh.f32 %v500_v23  ;;  %v1283_v9 = vpop.eup %783  ;;  %v590_v26 = vmul.f32 %v1234_v33, %v1257_v25  ;;  %v591_v59 = vmul.f32 %v1236_v27, %v1257_v25  ;;  %v592_v3 = vmul.f32 %v1242_v60, %v1257_v25 }
  0xb7   :  { %803 = vtanh.f32 %v501_v24  ;;  %v617_v61 = vadd.f32 %v593_v31, %v589_v41 }
  0xb8   :  { %v1286_v36 = vpop.eup %785  ;;  %805 = vtanh.f32 %v502_v44  ;;  %v631_v0 = vadd.f32 %v594_v46, %v590_v26  ;;  %v644_v2 = vadd.f32 %v595_v14, %v591_v59  ;;  %v587_v24 = vpop.permute.xlu1 %586 }
  0xb9   :  { %v788_v48 = vpop.eup %787  ;;  %807 = vtanh.f32 %v503_v49  ;;  %v582_v25 = vpop.permute.xlu0 %581 }
  0xba   :  { %v790_v55 = vpop.eup %789  ;;  %809 = vtanh.f32 %v504_v4  ;;  %v613_v12 = vmul.f32 %v788_v48, %v587_v24  ;;  %v611_v46 = vmul.f32 %v1286_v36, %v582_v25 }
  0xbb   :  { %v792_v34 = vpop.eup %791  ;;  %811 = vtanh.f32 %v505_v51  ;;  %v614_v13 = vmul.f32 %v790_v55, %v587_v24  ;;  %v609_v51 = vmul.f32 %v1276_v7, %v582_v25 }
  0xbc   :  { %v794_v53 = vpop.eup %793  ;;  %813 = vtanh.f32 %v506_v11  ;;  %v615_v56 = vmul.f32 %v792_v34, %v587_v24  ;;  %v623_v41 = vsel %vm622_vm10, %v613_v12, 0.0 }
  0xbd   :  { %v796_v54 = vpop.eup %795  ;;  %815 = vtanh.f32 %v507_v52  ;;  %v610_v52 = vmul.f32 %v1283_v9, %v582_v25  ;;  %v636_v7 = vsel %vm622_vm10, %v614_v13, 0.0 }
  0xbe   :  { %v798_v57 = vpop.eup %797  ;;  %817 = vtanh.f32 %v508_v38  ;;  %v612_v14 = vmul.f32 %v796_v54, %v582_v25  ;;  %v649_v34 = vsel %vm622_vm10, %v615_v56, 0.0 }
  0xbf   :  { %v800_v62 = vpop.eup %799  ;;  %819 = vtanh.f32 %v509_v22  ;;  %v596_v35 = vmul.f32 %v798_v57, %v562_v47  ;;  %v616_v22 = vmul.f32 %v794_v53, %v587_v24 }
  0xc0   :  { %v802_v1 = vpop.eup %801  ;;  %821 = vtanh.f32 %v510_v18  ;;  %v597_v40 = vmul.f32 %v800_v62, %v567_v15 }
  0xc1   :  { %v804_v33 = vpop.eup %803  ;;  %v598_v10 = vmul.f32 %v802_v1, %v567_v15  ;;  %v657_v17 = vadd.f32 %v596_v35, %v592_v3  ;;  %v662_v62 = vsel %vm622_vm10, %v616_v22, 0.0 }
  0xc2   :  { %v806_v19 = vpop.eup %805  ;;  %v599_v30 = vmul.f32 %v804_v33, %v567_v15  ;;  %v618_v23 = vadd.f32 %v617_v61, %v597_v40 }
  0xc3   :  { %v808_v27 = vpop.eup %807  ;;  %v600_v32 = vmul.f32 %v806_v19, %v567_v15  ;;  %v632_v45 = vadd.f32 %v631_v0, %v598_v10 }
  0xc4   :  { %v810_v21 = vpop.eup %809  ;;  %v601_v37 = vmul.f32 %v808_v27, %v572_v63  ;;  %v645_v42 = vadd.f32 %v644_v2, %v599_v30 }
  0xc5   :  { %v812_v60 = vpop.eup %811  ;;  %v602_v43 = vmul.f32 %v810_v21, %v572_v63  ;;  %v658_v44 = vadd.f32 %v657_v17, %v600_v32  ;;  %v674_v21 = vpop.permute.xlu0 %673 }
  0xc6   :  { %v814_v5 = vpop.eup %813  ;;  %v603_v6 = vmul.f32 %v812_v60, %v572_v63  ;;  %v619_v8 = vadd.f32 %v618_v23, %v601_v37  ;;  %v854_v23 = vmov 1966171168  }
  0xc7   :  { %v816_v49 = vpop.eup %815  ;;  %v604_v50 = vmul.f32 %v814_v5, %v572_v63  ;;  %v633_v4 = vadd.f32 %v632_v45, %v602_v43  ;;  %v691_v27 = vunpack.c.l.s4 %v854_v23  ;;  %v679_v5 = vrot.slane %v674_v21, %v1110_v39 }
  0xc8   :  { %v818_v47 = vpop.eup %817  ;;  %v605_v15 = vmul.f32 %v816_v49, %v577_v58  ;;  %v646_v16 = vadd.f32 %v645_v42, %v603_v6 }
  0xc9   :  { %v820_v11 = vpop.eup %819  ;;  %v606_v28 = vmul.f32 %v818_v47, %v577_v58  ;;  %v659_v38 = vadd.f32 %v658_v44, %v604_v50  ;;  %v692_v44 = vunpack.c.0.s8 %v691_v27 }
  0xca   :  { %v822_v31 = vpop.eup %821  ;;  %v607_v18 = vmul.f32 %v820_v11, %v577_v58  ;;  %v620_v48 = vadd.f32 %v619_v8, %v605_v15 }
  0xcb   :  { %v608_v55 = vmul.f32 %v822_v31, %v577_v58  ;;  %v634_v26 = vadd.f32 %v633_v4, %v606_v28 }
  0xcc   :  { %v621_v57 = vadd.f32 %v620_v48, %v609_v51  ;;  %v647_v59 = vadd.f32 %v646_v16, %v607_v18  ;;  %v695_v51 = vsub.s32 %v692_v44, %v1103_v29 }
  0xcd   :  { %v635_v9 = vadd.f32 %v634_v26, %v610_v52  ;;  %v660_v61 = vadd.f32 %v659_v38, %v608_v55 }
  0xce   :  { %v624_v53 = vadd.f32 %v623_v41, %v621_v57  ;;  %v648_v63 = vadd.f32 %v647_v59, %v611_v46 }
  0xcf   :  { %v637_v36 = vadd.f32 %v636_v7, %v635_v9  ;;  %v661_v3 = vadd.f32 %v660_v61, %v612_v14 }
  0xd0   :  { %v625_v35 = vrot.slane %v624_v53, 4  ;;  %v650_v0 = vadd.f32 %v649_v34, %v648_v63 }
  0xd1   :  { %v638_v1 = vrot.slane %v637_v36, 4  ;;  %v663_v54 = vadd.f32 %v662_v62, %v661_v3 }
  0xd2   :  { %v626_v58 = vadd.f32 %v625_v35, %v624_v53  ;;  %v651_v40 = vrot.slane %v650_v0, 4 }
  0xd3   :  { %v639_v2 = vadd.f32 %v638_v1, %v637_v36  ;;  %v664_v33 = vrot.slane %v663_v54, 4 }
  0xd4   :  { %v627_v10 = vrot.slane %v626_v58, 2  ;;  %v652_v17 = vadd.f32 %v651_v40, %v650_v0 }
  0xd5   :  { %v640_v19 = vrot.slane %v639_v2, 2  ;;  %v665_v30 = vadd.f32 %v664_v33, %v663_v54 }
  0xd6   :  { %v628_v32 = vadd.f32 %v627_v10, %v626_v58  ;;  %v653_v45 = vrot.slane %v652_v17, 2 }
  0xd7   :  { %v641_v24 = vadd.f32 %v640_v19, %v639_v2  ;;  %v666_v37 = vrot.slane %v665_v30, 2 }
  0xd8   :  { %v629_v42 = vrot.slane %v628_v32, 1  ;;  %v654_v60 = vadd.f32 %v653_v45, %v652_v17 }
  0xd9   :  { %v642_v25 = vrot.slane %v641_v24, 1  ;;  %v667_v43 = vadd.f32 %v666_v37, %v665_v30 }
  0xda   :  { %v630_v6 = vadd.f32 %v629_v42, %v628_v32  ;;  %v655_v8 = vrot.slane %v654_v60, 1 }
  0xdb   :  { %v643_v49 = vadd.f32 %v642_v25, %v641_v24  ;;  %v668_v12 = vrot.slane %v667_v43, 1 }
  0xdc   :  { %v656_v50 = vadd.f32 %v655_v8, %v654_v60  ;;  %v680_v4 = vadd.f32 %v679_v5, %v630_v6 }
  0xdd   :  { %v669_v47 = vadd.f32 %v668_v12, %v667_v43  ;;  %v681_v13 = vadd.f32 %v679_v5, %v643_v49 }
  0xde   :  { %v682_v15 = vadd.f32 %v679_v5, %v656_v50 }
  0xdf   :  { %v683_v16 = vadd.f32 %v679_v5, %v669_v47  ;;  %v688_v11 = vcombine.low %v680_v4, %v681_v13 }
  0xe1   :  { %v689_v56 = vcombine.low %v682_v15, %v683_v16  ;;  %v696_v52 = vrot.slane %v688_v11, %v695_v51 }
  0xe3   :  { %v703_v28 = vrot.slane %v689_v56, %v695_v51 }
  0xe5   :  { %v704_v38 = vcombine.low %v696_v52, %v703_v28 }
  0xe7   :  { %v711_v39 = vrot.slane %v704_v38, %v695_v51 }
  0xe9   :  { %717 = vst.msk [vmem:[#allocation3] sm:$0xf] %vm715_vm11, %v711_v39 }
  0xea   :  { %834 = shalt.err (!%p831_p4)
}
  0xeb   :  { %s835_s11 = scalar_lea.hbm %s1330_s7, 64 }
  0xec   :  { %p836_p5 = scmp.ne.s32.totalorder %s1330_s7, %s835_s11  ;;  %p839_p6 = scmp.lt.u32.totalorder %s835_s11, %s1330_s7 }
  0xee   :  { %p841_p7 = pnand %p839_p6, %p836_p5 }
  0xf0   :  { %844 = shalt.err (!%p841_p7)
}
  0xf1   :  { %727 = dma.vmem_to_hbm [thread:$0]  %s725_s8, 64, %s1330_s7, [#allocation4]  }
  0xf2   :  { %845 = dma.done.wait [#allocation4], 64  }
  0xf3   :  { %846 = vsyncadd [#allocation4], 4294967232 }
  0xf4   :  { %731 = vsyncpa [#allocation4], 1 }

</bundles_post_ra>
